<compile_context>
chip_gen: v6e
topology: v6e:2x2x1
jax: 0.10.0
libtpu: 0.0.40
codegen_flags: <defaults>
</compile_context>

<pallas_src>
import jax
import jax.numpy as jnp
from jax import lax
from jax.experimental import pallas as pl
from jax.experimental.pallas import tpu as pltpu


_MXU_MIN_CIN = 128  # below this, contract Cin on the VPU (broadcast MACs)


# ---------------------------------------------------------------------------
# Hardware-aware tiling helpers
# ---------------------------------------------------------------------------
def _vmem_capacity_bytes():
    try:
        return int(pltpu.get_tpu_info().vmem_capacity_bytes)
    except Exception:
        return 64 * 1024 * 1024  # conservative fallback (v7x per-TC VMEM)


def _pick_hw_tile(hw, cin, budget_bytes):
    # Largest lane-aligned tile that divides HW and whose double-buffered
    # per-sample input fits the budget.  Fall back to a single full-extent
    # block (always a legal BlockSpec; no spatial padding is ever introduced).
    for t in (4096, 2048, 1024, 512, 256, 128):
        if hw % t == 0 and 2 * cin * t * 4 <= budget_bytes:
            return t
    return hw


def _pick_batch_tile(n, cin, hw_tile, budget_bytes):
    # Largest divisor of N whose double-buffered input tile fits the budget.
    # For N >= 4 keep at least 2 batch programs so the "parallel" grid axis
    # feeds both v7x TensorCores; for tiny N collapse fully (overhead-bound).
    per_sample = 2 * cin * hw_tile * 4
    cap = max(1, budget_bytes // max(per_sample, 1))
    if n >= 4:
        cap = min(cap, n // 2)
    nb = 1
    for d in range(1, n + 1):
        if n % d == 0 and d <= cap:
            nb = d
    return nb


# ---------------------------------------------------------------------------
# Fused kernel factory: 1x1-conv + ReLU + global-avg-pool + (BN-folded) Linear
# ---------------------------------------------------------------------------
def _make_fused_kernel(nb, cin, hw_tile, acc_lanes, use_mxu):
    n_chunks = hw_tile // acc_lanes  # hw_tile % acc_lanes == 0 by construction

    def kernel(x_ref, wc_ref, bc_ref, fcw_ref, fcb_ref, o_ref, acc_ref):
        # x_ref  : (Nb, Cin, hw_tile)     NCHW spatial tile of an Nb-sample batch tile
        # wc_ref : (Cf, Cin) [MXU path]   or (Cin, Cf, 1) [VPU path] conv weight
        # bc_ref : (Cf, 1)                conv bias
        # fcw_ref: (Cf, A_pad)            FC weight, BN scale & 1/HW folded, lane-padded
        # fcb_ref: (1, A_pad)             FC bias, BN folded, lane-padded
        # o_ref  : (1, Nb, A_pad)         logits slab for this batch tile
        # acc_ref: (Nb, Cf, acc_lanes)    lane-wise pooled-sum accumulator (f32 VMEM)
        s = pl.program_id(1)

        @pl.when(s == 0)
        def _init():
            acc_ref[...] = jnp.zeros_like(acc_ref)

        bc = bc_ref[...]                                   # (Cf, 1), hoisted
        if use_mxu:
            wc_full = wc_ref[...]                          # (Cf, Cin)
        else:
            wc_cols = [wc_ref[c] for c in range(cin)]      # Cin x (Cf, 1), hoisted

        for b in range(nb):                                # static unroll over batch tile
            x_b = x_ref[b]                                 # (Cin, hw_tile)
            if use_mxu:
                feat = jnp.dot(wc_full, x_b,
                               preferred_element_type=jnp.float32,
                               precision=lax.Precision.HIGHEST)
            else:
                # tiny-Cin contraction on the VPU: Cin broadcast multiply-adds
                feat = wc_cols[0] * x_b[0:1, :]
                for c in range(1, cin):
                    feat = feat + wc_cols[c] * x_b[c:c + 1, :]
            feat = jnp.maximum(feat + bc, 0.0)             # bias + ReLU (Cf, hw_tile)

            # Lane-aligned partial sums only (VALU); defer the XLU lane reduce.
            part = feat[:, 0:acc_lanes]
            for j in range(1, n_chunks):
                part = part + feat[:, j * acc_lanes:(j + 1) * acc_lanes]
            acc_ref[b] += part

        @pl.when(s == pl.num_programs(1) - 1)
        def _finalize():
            fcw = fcw_ref[...]                             # (Cf, A_pad)
            fcb = fcb_ref[...]                             # (1, A_pad)
            rows = []
            for b in range(nb):
                pooled = jnp.sum(acc_ref[b], axis=1, keepdims=True)   # (Cf, 1), one XLU reduce
                rows.append(jnp.sum(fcw * pooled, axis=0, keepdims=True) + fcb)
            o_ref[0] = jnp.concatenate(rows, axis=0) if nb > 1 else rows[0]

    return kernel


# ---------------------------------------------------------------------------
# Wrapper
# ---------------------------------------------------------------------------
def feat_classifier_forward(x_nchw, params, *, bn_eps=1e-5):
    """x_nchw: (N, Cin, H, W) float32 -> logits (N, nattr)."""
    N, Cin, H, W = x_nchw.shape
    HW = H * W
    Cf = params["conv_w"].shape[1]
    A = params["fc_w"].shape[1]
    A_pad = ((A + 127) // 128) * 128                      # lane-dense output slab

    vmem_cap = _vmem_capacity_bytes()
    vmem_limit = int(min(vmem_cap * 3 // 4, 100 * 1024 * 1024))
    input_budget = vmem_limit // 2                        # leave room for params/acc/output

    hw_tile = _pick_hw_tile(HW, Cin, input_budget)
    assert HW % hw_tile == 0
    S = HW // hw_tile
    Nb = _pick_batch_tile(N, Cin, hw_tile, input_budget)
    NB = N // Nb

    acc_lanes = 128 if hw_tile % 128 == 0 else hw_tile
    use_mxu = Cin >= _MXU_MIN_CIN

    # NCHW -> (N, Cin, HW): trailing-dim merge only; no transpose / HBM copy.
    x3 = x_nchw.reshape(N, Cin, HW)

    # One-time parameter folding (tiny tensors, outside the hot path):
    #   BN(eval):  out = gamma * (y - mean) * rsqrt(var+eps) + beta
    #   mean-pool: pooled = spatial_sum / HW
    bc = params["conv_b"].reshape(Cf, 1)                              # (Cf, 1)
    scale = params["bn_gamma"] * lax.rsqrt(params["bn_var"] + bn_eps)  # (A,)
    fcw = params["fc_w"] * scale[None, :] * (1.0 / HW)                 # (Cf, A)
    fcb = ((params["fc_b"] - params["bn_mean"]) * scale
           + params["bn_beta"]).reshape(1, A)                          # (1, A)
    fcw = jnp.pad(fcw, ((0, 0), (0, A_pad - A)))                       # (Cf, A_pad)
    fcb = jnp.pad(fcb, ((0, 0), (0, A_pad - A)))                       # (1, A_pad)

    if use_mxu:
        wc = params["conv_w"].T                                        # (Cf, Cin)
        wc_spec = pl.BlockSpec((Cf, Cin), lambda n, s: (0, 0))
    else:
        # One (Cf, 1) column per input channel: leading-axis indexing in-kernel,
        # no lane slicing needed on the VPU path.
        wc = params["conv_w"].reshape(Cin, Cf, 1)
        wc_spec = pl.BlockSpec((Cin, Cf, 1), lambda n, s: (0, 0, 0))

    kernel = _make_fused_kernel(Nb, Cin, hw_tile, acc_lanes, use_mxu)

    out = pl.pallas_call(
        kernel,
        out_shape=jax.ShapeDtypeStruct((NB, Nb, A_pad), jnp.float32),
        grid_spec=pltpu.PrefetchScalarGridSpec(
            num_scalar_prefetch=0,
            grid=(NB, S),                                  # reduction (spatial) axis last
            in_specs=[
                pl.BlockSpec((Nb, Cin, hw_tile), lambda n, s: (n, 0, s)),
                wc_spec,
                pl.BlockSpec((Cf, 1), lambda n, s: (0, 0)),
                pl.BlockSpec((Cf, A_pad), lambda n, s: (0, 0)),
                pl.BlockSpec((1, A_pad), lambda n, s: (0, 0)),
            ],
            out_specs=pl.BlockSpec((1, Nb, A_pad), lambda n, s: (n, 0, 0)),
            scratch_shapes=[pltpu.VMEM((Nb, Cf, acc_lanes), jnp.float32)],
        ),
        compiler_params=pltpu.CompilerParams(
            dimension_semantics=("parallel", "arbitrary"),
            vmem_limit_bytes=vmem_limit,
        ),
    )(x3, wc, bc, fcw, fcb)

    return out.reshape(N, A_pad)[:, :A]


# ---------------------------------------------------------------------------
# Pure-JAX reference of the same forward pass
# ---------------------------------------------------------------------------
def _reference(x, p, bn_eps=1e-5):
    N, Cin, H, W = x.shape
    xf = jnp.transpose(x, (0, 2, 3, 1)).reshape(N * H * W, Cin)
    f = jnp.maximum(xf @ p["conv_w"] + p["conv_b"], 0.0).reshape(N, H * W, -1)
    pooled = jnp.mean(f, axis=1)
    y = pooled @ p["fc_w"] + p["fc_b"]
    return p["bn_gamma"] * (y - p["bn_mean"]) / jnp.sqrt(p["bn_var"] + bn_eps) + p["bn_beta"]


if __name__ == "__main__":
    # Small, deterministic shapes
    N, Cin, H, W = 2, 4, 16, 16      # input (NCHW)
    Cf = 32                          # backbone feature channels
    nattr = 8                        # classifier output attributes

    key = jax.random.PRNGKey(0)
    k1, k2, k3, k4, k5 = jax.random.split(key, 5)

    params = {
        "conv_w": jax.random.normal(k1, (Cin, Cf), jnp.float32) * 0.1,
        "conv_b": jax.random.normal(k2, (Cf,), jnp.float32) * 0.1,
        "fc_w": jax.random.normal(k3, (Cf, nattr), jnp.float32) * 0.1,
        "fc_b": jax.random.normal(k4, (nattr,), jnp.float32) * 0.1,
        "bn_gamma": jnp.linspace(0.9, 1.1, nattr, dtype=jnp.float32),
        "bn_beta": jnp.linspace(-0.1, 0.1, nattr, dtype=jnp.float32),
        "bn_mean": jnp.linspace(-0.05, 0.05, nattr, dtype=jnp.float32),
        "bn_var": jnp.linspace(0.8, 1.2, nattr, dtype=jnp.float32),
    }

    x = jax.random.normal(k5, (N, Cin, H, W), jnp.float32)

    logits = feat_classifier_forward(x, params)
    logits = jax.block_until_ready(logits)

    ref = _reference(x, params)
    assert logits.shape == (N, nattr)
    assert jnp.allclose(logits, ref, atol=1e-4, rtol=1e-4), "mismatch vs reference"

    print("KERNEL_OK")
</pallas_src>

<mosaic_0001>
module attributes {stable_mosaic.version = 11 : i64} {
  func.func @kernel(%arg0: i32, %arg1: i32, %arg2: memref<2x4x256xf32, #tpu.memory_space<vmem>>, %arg3: memref<4x32x1xf32, #tpu.memory_space<vmem>>, %arg4: memref<32x1xf32, #tpu.memory_space<vmem>>, %arg5: memref<32x128xf32, #tpu.memory_space<vmem>>, %arg6: memref<1x128xf32, #tpu.memory_space<vmem>>, %arg7: memref<1x2x128xf32, #tpu.memory_space<vmem>>, %arg8: memref<2x32x128xf32, #tpu.memory_space<vmem>>) attributes {dimension_semantics = [#tpu.dimension_semantics<parallel>, #tpu.dimension_semantics<arbitrary>], iteration_bounds = array<i64: 1, 1>, scalar_prefetch = 0 : i64, scratch_operands = 1 : i64, tpu.core_type = #tpu.core_type<tc>, window_params = [{transform_indices = @transform_0, window_bounds = array<i64: 2, 4, 256>}, {pipeline_mode = #tpu.pipeline_mode<synchronous>, transform_indices = @transform_1, window_bounds = array<i64: 4, 32, 1>}, {pipeline_mode = #tpu.pipeline_mode<synchronous>, transform_indices = @transform_2, window_bounds = array<i64: 32, 1>}, {pipeline_mode = #tpu.pipeline_mode<synchronous>, transform_indices = @transform_3, window_bounds = array<i64: 32, 128>}, {pipeline_mode = #tpu.pipeline_mode<synchronous>, transform_indices = @transform_4, window_bounds = array<i64: 1, 128>}, {transform_indices = @transform_5, window_bounds = array<i64: 1, 2, 128>}]} {
    %c0_i32 = arith.constant 0 : i32
    %0 = arith.cmpi eq, %arg1, %c0_i32 : i32
    %1 = arith.extui %0 : i1 to i32
    %c0_i32_0 = arith.constant 0 : i32
    %2 = arith.cmpi ne, %1, %c0_i32_0 : i32
    scf.if %2 {
      %cst_32 = arith.constant 0.000000e+00 : f32
      %83 = vector.broadcast %cst_32 : f32 to vector<2x32x128xf32>
      %c0_33 = arith.constant 0 : index
      %c0_34 = arith.constant 0 : index
      %c0_35 = arith.constant 0 : index
      %84 = vector.load %arg8[%c0_33, %c0_34, %c0_35] : memref<2x32x128xf32, #tpu.memory_space<vmem>>, vector<2x32x128xf32>
      tpu.vector_store %arg8[%c0_33, %c0_34, %c0_35], %83 {strides = array<i32>} : memref<2x32x128xf32, #tpu.memory_space<vmem>>, vector<2x32x128xf32>,
    } else {
    }
    %c0 = arith.constant 0 : index
    %c0_1 = arith.constant 0 : index
    %3 = vector.load %arg4[%c0, %c0_1] : memref<32x1xf32, #tpu.memory_space<vmem>>, vector<32x1xf32>
    %c0_2 = arith.constant 0 : index
    %c0_3 = arith.constant 0 : index
    %c0_4 = arith.constant 0 : index
    %4 = vector.load %arg3[%c0_2, %c0_3, %c0_4] : memref<4x32x1xf32, #tpu.memory_space<vmem>>, vector<1x32x1xf32>
    %5 = vector.shape_cast %4 : vector<1x32x1xf32> to vector<32x1xf32>
    %c1 = arith.constant 1 : index
    %c0_5 = arith.constant 0 : index
    %c0_6 = arith.constant 0 : index
    %6 = vector.load %arg3[%c1, %c0_5, %c0_6] : memref<4x32x1xf32, #tpu.memory_space<vmem>>, vector<1x32x1xf32>
    %7 = vector.shape_cast %6 : vector<1x32x1xf32> to vector<32x1xf32>
    %c2 = arith.constant 2 : index
    %c0_7 = arith.constant 0 : index
    %c0_8 = arith.constant 0 : index
    %8 = vector.load %arg3[%c2, %c0_7, %c0_8] : memref<4x32x1xf32, #tpu.memory_space<vmem>>, vector<1x32x1xf32>
    %9 = vector.shape_cast %8 : vector<1x32x1xf32> to vector<32x1xf32>
    %c3 = arith.constant 3 : index
    %c0_9 = arith.constant 0 : index
    %c0_10 = arith.constant 0 : index
    %10 = vector.load %arg3[%c3, %c0_9, %c0_10] : memref<4x32x1xf32, #tpu.memory_space<vmem>>, vector<1x32x1xf32>
    %11 = vector.shape_cast %10 : vector<1x32x1xf32> to vector<32x1xf32>
    %c0_11 = arith.constant 0 : index
    %c0_12 = arith.constant 0 : index
    %c0_13 = arith.constant 0 : index
    %12 = vector.load %arg2[%c0_11, %c0_12, %c0_13] : memref<2x4x256xf32, #tpu.memory_space<vmem>>, vector<1x4x256xf32>
    %13 = vector.shape_cast %12 : vector<1x4x256xf32> to vector<4x256xf32>
    %14 = vector.extract_strided_slice %13 {offsets = [0, 0], sizes = [1, 256], strides = [1, 1]} : vector<4x256xf32> to vector<1x256xf32>
    %15 = vector.broadcast %5 : vector<32x1xf32> to vector<32x256xf32>
    %16 = vector.broadcast %14 : vector<1x256xf32> to vector<32x256xf32>
    %17 = arith.mulf %15, %16 : vector<32x256xf32>
    %18 = vector.extract_strided_slice %13 {offsets = [1, 0], sizes = [1, 256], strides = [1, 1]} : vector<4x256xf32> to vector<1x256xf32>
    %19 = vector.broadcast %7 : vector<32x1xf32> to vector<32x256xf32>
    %20 = vector.broadcast %18 : vector<1x256xf32> to vector<32x256xf32>
    %21 = arith.mulf %19, %20 : vector<32x256xf32>
    %22 = arith.addf %17, %21 : vector<32x256xf32>
    %23 = vector.extract_strided_slice %13 {offsets = [2, 0], sizes = [1, 256], strides = [1, 1]} : vector<4x256xf32> to vector<1x256xf32>
    %24 = vector.broadcast %9 : vector<32x1xf32> to vector<32x256xf32>
    %25 = vector.broadcast %23 : vector<1x256xf32> to vector<32x256xf32>
    %26 = arith.mulf %24, %25 : vector<32x256xf32>
    %27 = arith.addf %22, %26 : vector<32x256xf32>
    %28 = vector.extract_strided_slice %13 {offsets = [3, 0], sizes = [1, 256], strides = [1, 1]} : vector<4x256xf32> to vector<1x256xf32>
    %29 = vector.broadcast %11 : vector<32x1xf32> to vector<32x256xf32>
    %30 = vector.broadcast %28 : vector<1x256xf32> to vector<32x256xf32>
    %31 = arith.mulf %29, %30 : vector<32x256xf32>
    %32 = arith.addf %27, %31 : vector<32x256xf32>
    %33 = vector.broadcast %3 : vector<32x1xf32> to vector<32x256xf32>
    %34 = arith.addf %32, %33 : vector<32x256xf32>
    %cst = arith.constant 0.000000e+00 : f32
    %35 = vector.broadcast %cst : f32 to vector<32x256xf32>
    %36 = arith.maximumf %34, %35 : vector<32x256xf32>
    %37 = vector.extract_strided_slice %36 {offsets = [0, 0], sizes = [32, 128], strides = [1, 1]} : vector<32x256xf32> to vector<32x128xf32>
    %38 = vector.extract_strided_slice %36 {offsets = [0, 128], sizes = [32, 128], strides = [1, 1]} : vector<32x256xf32> to vector<32x128xf32>
    %39 = arith.addf %37, %38 : vector<32x128xf32>
    %c0_14 = arith.constant 0 : index
    %c0_15 = arith.constant 0 : index
    %c0_16 = arith.constant 0 : index
    %40 = vector.load %arg8[%c0_14, %c0_15, %c0_16] : memref<2x32x128xf32, #tpu.memory_space<vmem>>, vector<1x32x128xf32>
    %41 = vector.shape_cast %40 : vector<1x32x128xf32> to vector<32x128xf32>
    %42 = arith.addf %41, %39 : vector<32x128xf32>
    %c0_17 = arith.constant 0 : index
    %c0_18 = arith.constant 0 : index
    %c0_19 = arith.constant 0 : index
    %43 = vector.load %arg8[%c0_17, %c0_18, %c0_19] : memref<2x32x128xf32, #tpu.memory_space<vmem>>, vector<1x32x128xf32>
    %44 = vector.shape_cast %43 : vector<1x32x128xf32> to vector<32x128xf32>
    %45 = vector.shape_cast %42 : vector<32x128xf32> to vector<1x32x128xf32>
    tpu.vector_store %arg8[%c0_17, %c0_18, %c0_19], %45 {strides = array<i32>} : memref<2x32x128xf32, #tpu.memory_space<vmem>>, vector<1x32x128xf32>,
    %c1_20 = arith.constant 1 : index
    %c0_21 = arith.constant 0 : index
    %c0_22 = arith.constant 0 : index
    %46 = vector.load %arg2[%c1_20, %c0_21, %c0_22] : memref<2x4x256xf32, #tpu.memory_space<vmem>>, vector<1x4x256xf32>
    %47 = vector.shape_cast %46 : vector<1x4x256xf32> to vector<4x256xf32>
    %48 = vector.extract_strided_slice %47 {offsets = [0, 0], sizes = [1, 256], strides = [1, 1]} : vector<4x256xf32> to vector<1x256xf32>
    %49 = vector.broadcast %5 : vector<32x1xf32> to vector<32x256xf32>
    %50 = vector.broadcast %48 : vector<1x256xf32> to vector<32x256xf32>
    %51 = arith.mulf %49, %50 : vector<32x256xf32>
    %52 = vector.extract_strided_slice %47 {offsets = [1, 0], sizes = [1, 256], strides = [1, 1]} : vector<4x256xf32> to vector<1x256xf32>
    %53 = vector.broadcast %7 : vector<32x1xf32> to vector<32x256xf32>
    %54 = vector.broadcast %52 : vector<1x256xf32> to vector<32x256xf32>
    %55 = arith.mulf %53, %54 : vector<32x256xf32>
    %56 = arith.addf %51, %55 : vector<32x256xf32>
    %57 = vector.extract_strided_slice %47 {offsets = [2, 0], sizes = [1, 256], strides = [1, 1]} : vector<4x256xf32> to vector<1x256xf32>
    %58 = vector.broadcast %9 : vector<32x1xf32> to vector<32x256xf32>
    %59 = vector.broadcast %57 : vector<1x256xf32> to vector<32x256xf32>
    %60 = arith.mulf %58, %59 : vector<32x256xf32>
    %61 = arith.addf %56, %60 : vector<32x256xf32>
    %62 = vector.extract_strided_slice %47 {offsets = [3, 0], sizes = [1, 256], strides = [1, 1]} : vector<4x256xf32> to vector<1x256xf32>
    %63 = vector.broadcast %11 : vector<32x1xf32> to vector<32x256xf32>
    %64 = vector.broadcast %62 : vector<1x256xf32> to vector<32x256xf32>
    %65 = arith.mulf %63, %64 : vector<32x256xf32>
    %66 = arith.addf %61, %65 : vector<32x256xf32>
    %67 = vector.broadcast %3 : vector<32x1xf32> to vector<32x256xf32>
    %68 = arith.addf %66, %67 : vector<32x256xf32>
    %cst_23 = arith.constant 0.000000e+00 : f32
    %69 = vector.broadcast %cst_23 : f32 to vector<32x256xf32>
    %70 = arith.maximumf %68, %69 : vector<32x256xf32>
    %71 = vector.extract_strided_slice %70 {offsets = [0, 0], sizes = [32, 128], strides = [1, 1]} : vector<32x256xf32> to vector<32x128xf32>
    %72 = vector.extract_strided_slice %70 {offsets = [0, 128], sizes = [32, 128], strides = [1, 1]} : vector<32x256xf32> to vector<32x128xf32>
    %73 = arith.addf %71, %72 : vector<32x128xf32>
    %c1_24 = arith.constant 1 : index
    %c0_25 = arith.constant 0 : index
    %c0_26 = arith.constant 0 : index
    %74 = vector.load %arg8[%c1_24, %c0_25, %c0_26] : memref<2x32x128xf32, #tpu.memory_space<vmem>>, vector<1x32x128xf32>
    %75 = vector.shape_cast %74 : vector<1x32x128xf32> to vector<32x128xf32>
    %76 = arith.addf %75, %73 : vector<32x128xf32>
    %c1_27 = arith.constant 1 : index
    %c0_28 = arith.constant 0 : index
    %c0_29 = arith.constant 0 : index
    %77 = vector.load %arg8[%c1_27, %c0_28, %c0_29] : memref<2x32x128xf32, #tpu.memory_space<vmem>>, vector<1x32x128xf32>
    %78 = vector.shape_cast %77 : vector<1x32x128xf32> to vector<32x128xf32>
    %79 = vector.shape_cast %76 : vector<32x128xf32> to vector<1x32x128xf32>
    tpu.vector_store %arg8[%c1_27, %c0_28, %c0_29], %79 {strides = array<i32>} : memref<2x32x128xf32, #tpu.memory_space<vmem>>, vector<1x32x128xf32>,
    %c0_i32_30 = arith.constant 0 : i32
    %80 = arith.cmpi eq, %arg1, %c0_i32_30 : i32
    %81 = arith.extui %80 : i1 to i32
    %c0_i32_31 = arith.constant 0 : i32
    %82 = arith.cmpi ne, %81, %c0_i32_31 : i32
    scf.if %82 {
      %c0_32 = arith.constant 0 : index
      %c0_33 = arith.constant 0 : index
      %83 = vector.load %arg5[%c0_32, %c0_33] : memref<32x128xf32, #tpu.memory_space<vmem>>, vector<32x128xf32>
      %c0_34 = arith.constant 0 : index
      %c0_35 = arith.constant 0 : index
      %84 = vector.load %arg6[%c0_34, %c0_35] : memref<1x128xf32, #tpu.memory_space<vmem>>, vector<1x128xf32>
      %c0_36 = arith.constant 0 : index
      %c0_37 = arith.constant 0 : index
      %c0_38 = arith.constant 0 : index
      %85 = vector.load %arg8[%c0_36, %c0_37, %c0_38] : memref<2x32x128xf32, #tpu.memory_space<vmem>>, vector<1x32x128xf32>
      %86 = vector.shape_cast %85 : vector<1x32x128xf32> to vector<32x128xf32>
      %cst_39 = arith.constant dense<0.000000e+00> : vector<32xf32>
      %87 = vector.multi_reduction <add>, %86, %cst_39 [1] : vector<32x128xf32> to vector<32xf32>
      %88 = vector.shape_cast %87 : vector<32xf32> to vector<32x1xf32>
      %89 = vector.broadcast %88 : vector<32x1xf32> to vector<32x128xf32>
      %90 = arith.mulf %83, %89 : vector<32x128xf32>
      %cst_40 = arith.constant dense<0.000000e+00> : vector<128xf32>
      %91 = vector.multi_reduction <add>, %90, %cst_40 [0] : vector<32x128xf32> to vector<128xf32>
      %92 = vector.shape_cast %91 : vector<128xf32> to vector<1x128xf32>
      %93 = arith.addf %92, %84 : vector<1x128xf32>
      %c1_41 = arith.constant 1 : index
      %c0_42 = arith.constant 0 : index
      %c0_43 = arith.constant 0 : index
      %94 = vector.load %arg8[%c1_41, %c0_42, %c0_43] : memref<2x32x128xf32, #tpu.memory_space<vmem>>, vector<1x32x128xf32>
      %95 = vector.shape_cast %94 : vector<1x32x128xf32> to vector<32x128xf32>
      %cst_44 = arith.constant dense<0.000000e+00> : vector<32xf32>
      %96 = vector.multi_reduction <add>, %95, %cst_44 [1] : vector<32x128xf32> to vector<32xf32>
      %97 = vector.shape_cast %96 : vector<32xf32> to vector<32x1xf32>
      %98 = vector.broadcast %97 : vector<32x1xf32> to vector<32x128xf32>
      %99 = arith.mulf %83, %98 : vector<32x128xf32>
      %cst_45 = arith.constant dense<0.000000e+00> : vector<128xf32>
      %100 = vector.multi_reduction <add>, %99, %cst_45 [0] : vector<32x128xf32> to vector<128xf32>
      %101 = vector.shape_cast %100 : vector<128xf32> to vector<1x128xf32>
      %102 = arith.addf %101, %84 : vector<1x128xf32>
      %103 = tpu.concatenate %93, %102 in 0 : vector<1x128xf32>, vector<1x128xf32> -> vector<2x128xf32>
      %c0_46 = arith.constant 0 : index
      %c0_47 = arith.constant 0 : index
      %c0_48 = arith.constant 0 : index
      %104 = vector.load %arg7[%c0_46, %c0_47, %c0_48] : memref<1x2x128xf32, #tpu.memory_space<vmem>>, vector<1x2x128xf32>
      %105 = vector.shape_cast %104 : vector<1x2x128xf32> to vector<2x128xf32>
      %106 = vector.shape_cast %103 : vector<2x128xf32> to vector<1x2x128xf32>
      tpu.vector_store %arg7[%c0_46, %c0_47, %c0_48], %106 {strides = array<i32>} : memref<1x2x128xf32, #tpu.memory_space<vmem>>, vector<1x2x128xf32>,
    } else {
    }
    return
  }
  func.func @transform_0(%arg0: i32, %arg1: i32) -> (i32, i32, i32) {
    %c0_i32 = arith.constant 0 : i32
    %c0_i32_0 = arith.constant 0 : i32
    return %arg0, %c0_i32, %arg1 : i32, i32, i32
  }
  func.func @transform_1(%arg0: i32, %arg1: i32) -> (i32, i32, i32) {
    %c0_i32 = arith.constant 0 : i32
    %c0_i32_0 = arith.constant 0 : i32
    %c0_i32_1 = arith.constant 0 : i32
    %c0_i32_2 = arith.constant 0 : i32
    return %c0_i32, %c0_i32_0, %c0_i32_1 : i32, i32, i32
  }
  func.func @transform_2(%arg0: i32, %arg1: i32) -> (i32, i32) {
    %c0_i32 = arith.constant 0 : i32
    %c0_i32_0 = arith.constant 0 : i32
    %c0_i32_1 = arith.constant 0 : i32
    return %c0_i32, %c0_i32_0 : i32, i32
  }
  func.func @transform_3(%arg0: i32, %arg1: i32) -> (i32, i32) {
    %c0_i32 = arith.constant 0 : i32
    %c0_i32_0 = arith.constant 0 : i32
    %c0_i32_1 = arith.constant 0 : i32
    return %c0_i32, %c0_i32_0 : i32, i32
  }
  func.func @transform_4(%arg0: i32, %arg1: i32) -> (i32, i32) {
    %c0_i32 = arith.constant 0 : i32
    %c0_i32_0 = arith.constant 0 : i32
    %c0_i32_1 = arith.constant 0 : i32
    return %c0_i32, %c0_i32_0 : i32, i32
  }
  func.func @transform_5(%arg0: i32, %arg1: i32) -> (i32, i32, i32) {
    %c0_i32 = arith.constant 0 : i32
    %c0_i32_0 = arith.constant 0 : i32
    %c0_i32_1 = arith.constant 0 : i32
    return %arg0, %c0_i32, %c0_i32_0 : i32, i32, i32
  }
}

</mosaic_0001>

<bundles_post_ra>
// kernel: tpu_custom_call.1
= control target key start
LH: loop header
LB: loop body
LE: loop exit
PB: predicated region body
PF: predicated region fallthrough
CT: control target
= control target key end

     0   :  { %v601_v2 = vmov 0   ;;  %s833_s0 = inlined_call_operand.vmem [shape: f32[2,4,256], index: 0, kind: input, shape index: {}]   ;;  %s834_s1 = inlined_call_operand.vmem [shape: f32[4,32,1], index: 1, kind: input, shape index: {}]   ;;  %s835_s2 = inlined_call_operand.vmem [shape: f32[32,1], index: 2, kind: input, shape index: {}]   ;;  %s836_s3 = inlined_call_operand.vmem [shape: f32[32,128], index: 3, kind: input, shape index: {}]   ;;  %s837_s4 = inlined_call_operand.vmem [shape: f32[1,128], index: 4, kind: input, shape index: {}]   ;;  %s838_s5 = inlined_call_operand.hbm [shape: f32[1,2,128], index: 5, kind: output, shape index: {}]  }
   0x1   :  { %v562_v0 = vld [vmem:[%s834_s1 + $0x20] sm:$0xff]  ;;  %578 = vset.pattern.permute.xlu1 %v601_v2  ;;  %577 = vset.pattern.permute.xlu0 %v601_v2  ;;  %v563_v3 = vld [vmem:[%s834_s1 + $0x28] sm:$0xff]  ;;  %v564_v5 = vld [vmem:[%s834_s1 + $0x30] sm:$0xff] }
   0x2   :  { %v37_v1 = vld [vmem:[%s834_s1] sm:$0xff]  ;;  %106 = vperm.xlu1 %578, %v562_v0   ;;  %v38_v4 = vld [vmem:[%s834_s1 + $0x8] sm:$0xff]  ;;  %v39_v6 = vld [vmem:[%s834_s1 + $0x10] sm:$0xff] }
   0x3   :  { %59 = vperm.xlu0 %577, %v37_v1  }
   0x6   :  { %111 = vperm.xlu1 %578, %v563_v3  }
   0x7   :  { %64 = vperm.xlu0 %577, %v38_v4  }
   0x8   :  { %10 = vsyncpa [#allocation4], 0  ;;  %v567_v7 = vld [vmem:[%s834_s1 + $0x48] sm:$0xff]  ;;  %v566_v8 = vld [vmem:[%s834_s1 + $0x40] sm:$0xff]  ;;  %v78_v21 = vlaneseq  ;;  %s602_s18 = smov [#allocation3]   ;;  %vm545_vm0 = vcmask 1040384  }
   0x9   :  { %v565_v9 = vld [vmem:[%s834_s1 + $0x38] sm:$0xff]  ;;  %v570_v11 = vld [vmem:[%s834_s1 + $0x60] sm:$0xff]  ;;  %v568_v12 = vld [vmem:[%s834_s1 + $0x50] sm:$0xff]  ;;  %s554_s19 = sshll.u32 %s602_s18, 4  ;;  %s555_s19 = int_to_ptr.vmem [resolvable:$true] %s554_s19 }
   0xa   :  { %116 = vperm.xlu1 %578, %v564_v5   ;;  %v40_v10 = vld [vmem:[%s834_s1 + $0x18] sm:$0xff]  ;;  %v571_v14 = vld [vmem:[%s834_s1 + $0x68] sm:$0xff]  ;;  %v572_v16 = vld [vmem:[%s834_s1 + $0x70] sm:$0xff]  ;;  %v79_v22 = vshrl.u32 %v78_v21, 7  ;;  %s579_s20 = scalar_lea.vmem %s555_s19, 32  ;;  %p584_p1 = scmp.lt.s32.totalorder %s555_s19, %s555_s19 }
   0xb   :  { %69 = vperm.xlu0 %577, %v39_v6   ;;  %v569_v13 = vld [vmem:[%s834_s1 + $0x58] sm:$0xff]  ;;  %v34_v17 = vld [vmem:[%s835_s2 + $0x8] sm:$0xff]  ;;  %v33_v18 = vld [vmem:[%s835_s2] sm:$0xff]  ;;  %p580_p0 = scmp.ne.s32.totalorder %s555_s19, %s579_s20  ;;  %p585_p2 = scmp.lt.s32.totalorder %s579_s20, %s579_s20 }
   0xc   :  { %v573_v15 = vld [vmem:[%s834_s1 + $0x78] sm:$0xff]  ;;  %v35_v20 = vld [vmem:[%s835_s2 + $0x10] sm:$0xff]  ;;  %v126_v23 = vsub.s32 1, %v79_v22  ;;  %v130_v24 = vsub.s32 5, %v79_v22  ;;  %v696_v25 = vld [vmem:[%s833_s0] sm:$0xff]  ;;  %v80_v27 = vsub.s32 0, %v79_v22 }
   0xd   :  { %v36_v19 = vld [vmem:[%s835_s2 + $0x18] sm:$0xff]  ;;  %v701_v26 = vld [vmem:[%s833_s0 + $0x8] sm:$0xff]  ;;  %v84_v28 = vsub.s32 4, %v79_v22  ;;  %v180_v29 = vsub.s32 2, %v79_v22  ;;  %v184_v30 = vsub.s32 6, %v79_v22  ;;  %v234_v45 = vsub.s32 3, %v79_v22  ;;  %p586_p3 = por %p585_p2, %p584_p1 }
   0xe   :  { %165 = vperm.xlu1 %578, %v567_v7   ;;  %v127_v31 = vrot.slane %v696_v25, %v126_v23  ;;  %v131_v32 = vrot.slane %v696_v25, %v130_v24  ;;  %v350_v33 = vrot.slane %v701_v26, %v126_v23  ;;  %v354_v34 = vrot.slane %v701_v26, %v130_v24 }
   0xf   :  { %160 = vperm.xlu0 %577, %v566_v8   ;;  %v81_v35 = vrot.slane %v696_v25, %v80_v27  ;;  %v85_v36 = vrot.slane %v696_v25, %v84_v28  ;;  %v324_v37 = vrot.slane %v701_v26, %v80_v27  ;;  %v328_v38 = vrot.slane %v701_v26, %v84_v28  ;;  %p587_p4 = pnand %p586_p3, %p580_p0 }
  0x10   :  { %v181_v41 = vrot.slane %v696_v25, %v180_v29  ;;  %v185_v42 = vrot.slane %v696_v25, %v184_v30  ;;  %v384_v43 = vrot.slane %v701_v26, %v180_v29  ;;  %v388_v44 = vrot.slane %v701_v26, %v184_v30 }
  0x11   :  { %v238_v46 = vsub.s32 7, %v79_v22  ;;  %v715_v47 = vrot.slane %v127_v31, %v126_v23  ;;  %v717_v48 = vrot.slane %v131_v32, %v126_v23  ;;  %v719_v49 = vrot.slane %v350_v33, %v126_v23 }
  0x12   :  { %121 = vperm.xlu1 %578, %v565_v9   ;;  %v721_v50 = vrot.slane %v354_v34, %v126_v23  ;;  %v723_v51 = vrot.slane %v81_v35, %v80_v27  ;;  %v725_v52 = vrot.slane %v85_v36, %v80_v27  ;;  %v727_v53 = vrot.slane %v324_v37, %v80_v27 }
  0x13   :  { %74 = vperm.xlu0 %577, %v40_v10   ;;  %v729_v54 = vrot.slane %v328_v38, %v80_v27  ;;  %v731_v57 = vrot.slane %v181_v41, %v180_v29  ;;  %v733_v58 = vrot.slane %v185_v42, %v180_v29  ;;  %v735_v59 = vrot.slane %v384_v43, %v180_v29 }
  0x14   :  { %v737_v60 = vrot.slane %v388_v44, %v180_v29  ;;  %v235_v61 = vrot.slane %v696_v25, %v234_v45  ;;  %v239_v62 = vrot.slane %v696_v25, %v238_v46  ;;  %v418_v63 = vrot.slane %v701_v26, %v234_v45 }
  0x15   :  { %v422_v0 = vrot.slane %v701_v26, %v238_v46 }
  0x16   :  { %214 = vperm.xlu1 %578, %v570_v11   ;;  %v767_v29 = vrot.slane %v235_v61, %v234_v45  ;;  %v769_v30 = vrot.slane %v239_v62, %v234_v45  ;;  %v771_v31 = vrot.slane %v418_v63, %v234_v45 }
  0x17   :  { %170 = vperm.xlu0 %577, %v568_v12   ;;  %v773_v32 = vrot.slane %v422_v0, %v234_v45 }
  0x1a   :  { %175 = vperm.xlu1 %578, %v569_v13  }
  0x1b   :  { %219 = vperm.xlu0 %577, %v571_v14  }
  0x1e   :  { %229 = vperm.xlu1 %578, %v573_v15  }
  0x1f   :  { %224 = vperm.xlu0 %577, %v572_v16  }
  0x22   :  { %273 = vperm.xlu1 %578, %v34_v17  }
  0x23   :  { %268 = vperm.xlu0 %577, %v33_v18  }
  0x26   :  { %283 = vperm.xlu1 %578, %v36_v19  }
  0x27   :  { %278 = vperm.xlu0 %577, %v35_v20  }
  0x7d   :  { %v107_v39 = vpop.permute.xlu1 %106 }
  0x7e   :  { %v60_v40 = vpop.permute.xlu0 %59  ;;  %v142_v1 = vmul.f32 %v715_v47, %v107_v39  ;;  %v143_v2 = vmul.f32 %v717_v48, %v107_v39  ;;  %v365_v3 = vmul.f32 %v719_v49, %v107_v39  ;;  %v366_v4 = vmul.f32 %v721_v50, %v107_v39 }
  0x7f   :  { %v96_v5 = vmul.f32 %v723_v51, %v60_v40  ;;  %v97_v6 = vmul.f32 %v725_v52, %v60_v40  ;;  %v339_v7 = vmul.f32 %v727_v53, %v60_v40  ;;  %v340_v8 = vmul.f32 %v729_v54, %v60_v40 }
  0x81   :  { %v112_v55 = vpop.permute.xlu1 %111  ;;  %v150_v33 = vadd.f32 %v142_v1, %v96_v5  ;;  %v151_v34 = vadd.f32 %v143_v2, %v97_v6  ;;  %v373_v35 = vadd.f32 %v365_v3, %v339_v7  ;;  %v374_v36 = vadd.f32 %v366_v4, %v340_v8 }
  0x82   :  { %v65_v56 = vpop.permute.xlu0 %64  ;;  %v144_v9 = vmul.f32 %v715_v47, %v112_v55  ;;  %v145_v10 = vmul.f32 %v717_v48, %v112_v55  ;;  %v367_v11 = vmul.f32 %v719_v49, %v112_v55  ;;  %v368_v12 = vmul.f32 %v721_v50, %v112_v55 }
  0x83   :  { %v98_v15 = vmul.f32 %v723_v51, %v65_v56  ;;  %v99_v16 = vmul.f32 %v725_v52, %v65_v56  ;;  %v341_v17 = vmul.f32 %v727_v53, %v65_v56  ;;  %v342_v18 = vmul.f32 %v729_v54, %v65_v56 }
  0x85   :  { %v117_v13 = vpop.permute.xlu1 %116  ;;  %v152_v37 = vadd.f32 %v144_v9, %v98_v15  ;;  %v153_v38 = vadd.f32 %v145_v10, %v99_v16  ;;  %v375_v39 = vadd.f32 %v367_v11, %v341_v17  ;;  %v376_v40 = vadd.f32 %v368_v12, %v342_v18 }
  0x86   :  { %v70_v14 = vpop.permute.xlu0 %69  ;;  %v146_v19 = vmul.f32 %v715_v47, %v117_v13  ;;  %v147_v20 = vmul.f32 %v717_v48, %v117_v13  ;;  %v369_v21 = vmul.f32 %v719_v49, %v117_v13  ;;  %v370_v22 = vmul.f32 %v721_v50, %v117_v13 }
  0x87   :  { %v100_v23 = vmul.f32 %v723_v51, %v70_v14  ;;  %v101_v24 = vmul.f32 %v725_v52, %v70_v14  ;;  %v343_v25 = vmul.f32 %v727_v53, %v70_v14  ;;  %v344_v26 = vmul.f32 %v729_v54, %v70_v14 }
  0x89   :  { %v166_v27 = vpop.permute.xlu1 %165  ;;  %v154_v41 = vadd.f32 %v146_v19, %v100_v23  ;;  %v155_v42 = vadd.f32 %v147_v20, %v101_v24  ;;  %v377_v43 = vadd.f32 %v369_v21, %v343_v25  ;;  %v378_v44 = vadd.f32 %v370_v22, %v344_v26 }
  0x8a   :  { %v161_v28 = vpop.permute.xlu0 %160  ;;  %v198_v46 = vmul.f32 %v731_v57, %v166_v27  ;;  %v199_v55 = vmul.f32 %v733_v58, %v166_v27  ;;  %v401_v56 = vmul.f32 %v735_v59, %v166_v27  ;;  %v402_v45 = vmul.f32 %v737_v60, %v166_v27 }
  0x8b   :  { %v196_v63 = vmul.f32 %v731_v57, %v161_v28  ;;  %v197_v0 = vmul.f32 %v733_v58, %v161_v28  ;;  %v399_v1 = vmul.f32 %v735_v59, %v161_v28  ;;  %v400_v2 = vmul.f32 %v737_v60, %v161_v28 }
  0x8c   :  { %v206_v11 = vadd.f32 %v198_v46, %v152_v37  ;;  %v207_v12 = vadd.f32 %v199_v55, %v153_v38  ;;  %v409_v13 = vadd.f32 %v401_v56, %v375_v39  ;;  %v410_v14 = vadd.f32 %v402_v45, %v376_v40 }
  0x8d   :  { %v122_v61 = vpop.permute.xlu1 %121  ;;  %v204_v16 = vadd.f32 %v196_v63, %v150_v33  ;;  %v407_v17 = vadd.f32 %v399_v1, %v373_v35 }
  0x8e   :  { %v75_v62 = vpop.permute.xlu0 %74  ;;  %v148_v3 = vmul.f32 %v715_v47, %v122_v61  ;;  %v149_v4 = vmul.f32 %v717_v48, %v122_v61  ;;  %v371_v5 = vmul.f32 %v719_v49, %v122_v61  ;;  %v372_v6 = vmul.f32 %v721_v50, %v122_v61 }
  0x8f   :  { %v102_v7 = vmul.f32 %v723_v51, %v75_v62  ;;  %v103_v8 = vmul.f32 %v725_v52, %v75_v62  ;;  %v345_v9 = vmul.f32 %v727_v53, %v75_v62  ;;  %v346_v10 = vmul.f32 %v729_v54, %v75_v62 }
  0x90   :  { %v205_v48 = vadd.f32 %v197_v0, %v151_v34  ;;  %v408_v51 = vadd.f32 %v400_v2, %v374_v36 }
  0x91   :  { %v215_v15 = vpop.permute.xlu1 %214  ;;  %v156_v18 = vadd.f32 %v148_v3, %v102_v7  ;;  %v157_v54 = vadd.f32 %v149_v4, %v103_v8  ;;  %v379_v19 = vadd.f32 %v371_v5, %v345_v9  ;;  %v380_v20 = vadd.f32 %v372_v6, %v346_v10 }
  0x92   :  { %v171_v47 = vpop.permute.xlu0 %170  ;;  %v433_v49 = vmul.f32 %v771_v31, %v215_v15  ;;  %v434_v50 = vmul.f32 %v773_v32, %v215_v15  ;;  %v250_v52 = vmul.f32 %v767_v29, %v215_v15  ;;  %v251_v53 = vmul.f32 %v769_v30, %v215_v15 }
  0x93   :  { %v200_v21 = vmul.f32 %v731_v57, %v171_v47  ;;  %v201_v22 = vmul.f32 %v733_v58, %v171_v47  ;;  %v403_v23 = vmul.f32 %v735_v59, %v171_v47  ;;  %v404_v24 = vmul.f32 %v737_v60, %v171_v47 }
  0x94   :  { %v441_v33 = vadd.f32 %v433_v49, %v407_v17  ;;  %v442_v34 = vadd.f32 %v434_v50, %v408_v51  ;;  %v258_v37 = vadd.f32 %v250_v52, %v204_v16  ;;  %v259_v38 = vadd.f32 %v251_v53, %v205_v48 }
  0x95   :  { %v176_v25 = vpop.permute.xlu1 %175  ;;  %v208_v56 = vadd.f32 %v200_v21, %v154_v41  ;;  %v411_v45 = vadd.f32 %v403_v23, %v377_v43 }
  0x96   :  { %v220_v26 = vpop.permute.xlu0 %219  ;;  %v202_v27 = vmul.f32 %v731_v57, %v176_v25  ;;  %v203_v28 = vmul.f32 %v733_v58, %v176_v25  ;;  %v405_v35 = vmul.f32 %v735_v59, %v176_v25  ;;  %v406_v36 = vmul.f32 %v737_v60, %v176_v25 }
  0x97   :  { %v252_v39 = vmul.f32 %v767_v29, %v220_v26  ;;  %v253_v40 = vmul.f32 %v769_v30, %v220_v26  ;;  %v435_v46 = vmul.f32 %v771_v31, %v220_v26  ;;  %v436_v55 = vmul.f32 %v773_v32, %v220_v26 }
  0x98   :  { %v209_v57 = vadd.f32 %v201_v22, %v155_v42  ;;  %v412_v58 = vadd.f32 %v404_v24, %v378_v44  ;;  %v210_v63 = vadd.f32 %v202_v27, %v156_v18  ;;  %v211_v59 = vadd.f32 %v203_v28, %v157_v54 }
  0x99   :  { %v230_v61 = vpop.permute.xlu1 %229  ;;  %v413_v1 = vadd.f32 %v405_v35, %v379_v19  ;;  %v414_v2 = vadd.f32 %v406_v36, %v380_v20  ;;  %v443_v5 = vadd.f32 %v435_v46, %v409_v13  ;;  %v444_v6 = vadd.f32 %v436_v55, %v410_v14 }
  0x9a   :  { %v225_v62 = vpop.permute.xlu0 %224  ;;  %v439_v60 = vmul.f32 %v771_v31, %v230_v61  ;;  %v440_v0 = vmul.f32 %v773_v32, %v230_v61  ;;  %v260_v41 = vadd.f32 %v252_v39, %v206_v11  ;;  %v261_v42 = vadd.f32 %v253_v40, %v207_v12 }
  0x9b   :  { %v437_v3 = vmul.f32 %v771_v31, %v225_v62  ;;  %v438_v4 = vmul.f32 %v773_v32, %v225_v62  ;;  %v254_v43 = vmul.f32 %v767_v29, %v225_v62  ;;  %v255_v44 = vmul.f32 %v769_v30, %v225_v62 }
  0x9c   :  { %v447_v9 = vadd.f32 %v439_v60, %v413_v1  ;;  %v448_v10 = vadd.f32 %v440_v0, %v414_v2  ;;  %v256_v23 = vmul.f32 %v767_v29, %v230_v61  ;;  %v257_v27 = vmul.f32 %v769_v30, %v230_v61 }
  0x9d   :  { %v274_v7 = vpop.permute.xlu1 %273  ;;  %v445_v50 = vadd.f32 %v437_v3, %v411_v45  ;;  %v446_v32 = vadd.f32 %v438_v4, %v412_v58  ;;  %v262_v26 = vadd.f32 %v254_v43, %v208_v56 }
  0x9e   :  { %v269_v8 = vpop.permute.xlu0 %268  ;;  %v451_v15 = vadd.f32 %v443_v5, %v274_v7  ;;  %v452_v47 = vadd.f32 %v444_v6, %v274_v7  ;;  %v288_v18 = vadd.f32 %v274_v7, %v260_v41  ;;  %v289_v54 = vadd.f32 %v274_v7, %v261_v42  ;;  %v487_v5 = vld [vmem:[%s836_s3 + $0x10] sm:$0xff]  ;;  %v488_v7 = vld [vmem:[%s836_s3 + $0x18] sm:$0xff] }
  0x9f   :  { %v449_v16 = vadd.f32 %v441_v33, %v269_v8  ;;  %v450_v48 = vadd.f32 %v442_v34, %v269_v8  ;;  %v286_v49 = vadd.f32 %v269_v8, %v258_v37  ;;  %v287_v31 = vadd.f32 %v269_v8, %v259_v38 }
  0xa0   :  { %v459_v13 = vmax.f32 %v451_v15, 0.0  ;;  %v460_v14 = vmax.f32 %v452_v47, 0.0  ;;  %v263_v34 = vadd.f32 %v255_v44, %v209_v57  ;;  %v296_v36 = vmax.f32 %v288_v18, 0.0 }
  0xa1   :  { %v457_v11 = vmax.f32 %v449_v16, 0.0  ;;  %v458_v12 = vmax.f32 %v450_v48, 0.0  ;;  %v284_v17 = vpop.permute.xlu1 %283  ;;  %v294_v52 = vmax.f32 %v286_v49, 0.0  ;;  %v295_v53 = vmax.f32 %v287_v31, 0.0 }
  0xa2   :  { %v279_v51 = vpop.permute.xlu0 %278  ;;  %v466_v19 = vadd.f32 %v460_v14, %v459_v13  ;;  %v455_v24 = vadd.f32 %v447_v9, %v284_v17  ;;  %v456_v25 = vadd.f32 %v448_v10, %v284_v17  ;;  %v297_v37 = vmax.f32 %v289_v54, 0.0 }
  0xa3   :  { %v465_v20 = vadd.f32 %v458_v12, %v457_v11  ;;  %v453_v21 = vadd.f32 %v445_v50, %v279_v51  ;;  %v454_v22 = vadd.f32 %v446_v32, %v279_v51  ;;  %v302_v35 = vadd.f32 %v295_v53, %v294_v52 }
  0xa4   :  { %522 = vadd.xlane.f32.xlu1 %v466_v19  ;;  %v290_v38 = vadd.f32 %v279_v51, %v262_v26  ;;  %v463_v40 = vmax.f32 %v455_v24, 0.0  ;;  %v464_v46 = vmax.f32 %v456_v25, 0.0  ;;  %v291_v55 = vadd.f32 %v279_v51, %v263_v34 }
  0xa5   :  { %520 = vadd.xlane.f32.xlu0 %v465_v20  ;;  %v461_v28 = vmax.f32 %v453_v21, 0.0  ;;  %v462_v33 = vmax.f32 %v454_v22, 0.0  ;;  %v264_v45 = vadd.f32 %v256_v23, %v210_v63  ;;  %v265_v29 = vadd.f32 %v257_v27, %v211_v59  ;;  %v486_v63 = vld [vmem:[%s836_s3 + $0x8] sm:$0xff]  ;;  %v485_v59 = vld [vmem:[%s836_s3] sm:$0xff] }
  0xa6   :  { %v303_v56 = vadd.f32 %v297_v37, %v296_v36  ;;  %v468_v30 = vadd.f32 %v464_v46, %v463_v40  ;;  %v298_v61 = vmax.f32 %v290_v38, 0.0  ;;  %v299_v62 = vmax.f32 %v291_v55, 0.0  ;;  %v489_v22 = vld [vmem:[%s837_s4] sm:$0x1] }
  0xa7   :  { %v467_v39 = vadd.f32 %v462_v33, %v461_v28  ;;  %v292_v58 = vadd.f32 %v284_v17, %v264_v45  ;;  %v293_v60 = vadd.f32 %v284_v17, %v265_v29 }
  0xa8   :  { %v304_v57 = vadd.f32 %v299_v62, %v298_v61 }
  0xa9   :  { %494 = vadd.xlane.f32.xlu0 %v302_v35  ;;  %524 = vadd.xlane.f32.xlu1 %v467_v39  ;;  %v300_v0 = vmax.f32 %v292_v58, 0.0  ;;  %v301_v1 = vmax.f32 %v293_v60, 0.0 }
  0xab   :  { %v305_v2 = vadd.f32 %v301_v1, %v300_v0 }
  0xad   :  { %496 = vadd.xlane.f32.xlu0 %v303_v56  ;;  %526 = vadd.xlane.f32.xlu1 %v468_v30 }
  0xb1   :  { %498 = vadd.xlane.f32.xlu0 %v304_v57 }
  0xb5   :  { %500 = vadd.xlane.f32.xlu0 %v305_v2 }
 0x12d   :  { %v523_v3 = vpop.xlane.xlu1 %522 }
 0x12e   :  { %v521_v4 = vpop.xlane.xlu0 %520  ;;  %v529_v6 = vmul.f32 %v523_v3, %v486_v63 }
 0x12f   :  { %v528_v41 = vmul.f32 %v521_v4, %v485_v59 }
 0x131   :  { %v532_v8 = vadd.f32 %v529_v6, %v528_v41 }
 0x132   :  { %v525_v42 = vpop.xlane.xlu1 %524  ;;  %v495_v43 = vpop.xlane.xlu0 %494 }
 0x133   :  { %v530_v44 = vmul.f32 %v525_v42, %v487_v5  ;;  %v502_v31 = vmul.f32 %v495_v43, %v485_v59 }
 0x135   :  { %v533_v15 = vadd.f32 %v532_v8, %v530_v44 }
 0x136   :  { %v527_v9 = vpop.xlane.xlu1 %526  ;;  %v497_v10 = vpop.xlane.xlu0 %496 }
 0x137   :  { %v531_v47 = vmul.f32 %v527_v9, %v488_v7  ;;  %v503_v48 = vmul.f32 %v497_v10, %v486_v63 }
 0x139   :  { %v534_v16 = vadd.f32 %v533_v15, %v531_v47  ;;  %v506_v14 = vadd.f32 %v503_v48, %v502_v31 }
 0x13a   :  { %v499_v49 = vpop.xlane.xlu0 %498 }
 0x13b   :  { %v535_v50 = vrot.slane %v534_v16, 4  ;;  %v504_v32 = vmul.f32 %v499_v49, %v487_v5 }
 0x13d   :  { %v536_v13 = vadd.f32 %v535_v50, %v534_v16  ;;  %v507_v17 = vadd.f32 %v506_v14, %v504_v32 }
 0x13e   :  { %v501_v11 = vpop.xlane.xlu0 %500 }
 0x13f   :  { %v537_v12 = vrot.slane %v536_v13, 2  ;;  %v505_v51 = vmul.f32 %v501_v11, %v488_v7 }
 0x141   :  { %v538_v52 = vadd.f32 %v537_v12, %v536_v13  ;;  %v508_v53 = vadd.f32 %v507_v17, %v505_v51 }
 0x143   :  { %v539_v18 = vrot.slane %v538_v52, 1  ;;  %v509_v54 = vrot.slane %v508_v53, 4 }
 0x145   :  { %v510_v19 = vadd.f32 %v509_v54, %v508_v53  ;;  %v540_v20 = vadd.f32 %v539_v18, %v538_v52 }
 0x147   :  { %v511_v21 = vrot.slane %v510_v19, 2  ;;  %v541_v25 = vadd.f32 %v540_v20, %v489_v22 }
 0x149   :  { %v512_v23 = vadd.f32 %v511_v21, %v510_v19  ;;  %v543_v28 = vrot.slane %v541_v25, 7 }
 0x14b   :  { %v513_v24 = vrot.slane %v512_v23, 1 }
 0x14d   :  { %v514_v26 = vadd.f32 %v513_v24, %v512_v23 }
 0x14f   :  { %v515_v27 = vadd.f32 %v514_v26, %v489_v22 }
 0x151   :  { %v546_v33 = vsel %vm545_vm0, %v515_v27, %v543_v28 }
 0x152   :  { %547 = vst [vmem:[#allocation3] sm:$0x3] %v546_v33 }
 0x153   :  { %590 = shalt.err (!%p587_p4)
}
 0x154   :  { %557 = dma.vmem_to_hbm [thread:$0]  %s555_s19, 32, %s838_s5, [#allocation4]  }
 0x155   :  { %599 = dma.done.wait [#allocation4], 32  }
 0x156   :  { %600 = vsyncadd [#allocation4], 4294967264 }
 0x157   :  { %561 = vsyncpa [#allocation4], 1 }

</bundles_post_ra>
